<compile_context>
chip_gen: v7x
topology: tpu7x:2x2x1
jax: 0.10.0
libtpu: 0.0.40
codegen_flags: <defaults>
</compile_context>

<pallas_src>
import math

import jax
import jax.numpy as jnp
from jax import lax
from jax.experimental import pallas as pl
from jax.experimental.pallas import tpu as pltpu


def _round_up(v, m):
    return ((v + m - 1) // m) * m


def _cdiv(a, b):
    return -(-a // b)


def _make_kernel(offsets, tm):
    """offsets: static flat-index shift of each (ky,kx) tap; tm: M tile size."""

    def kernel(w_ref, scale_ref, bias_ref, xa_ref, xb_ref, o_ref, acc_ref):
        # w_ref:     (kh*kw, CO_BLK, CI_BLK) bf16   conv taps (unscaled)
        # scale_ref: (CO_BLK, 1)             f32    gamma / sqrt(var + eps)
        # bias_ref:  (CO_BLK, 1)             f32    beta - mean * scale
        # xa_ref:    (CI_BLK, TM)            bf16   current flat-M window
        # xb_ref:    (CI_BLK, HALO)          bf16   halo: next HALO columns
        # o_ref:     (CO_BLK, TM)                   lane-dense output tile
        # acc_ref:   (CO_BLK, TM)            f32    accumulator over C_in chunks
        k = pl.program_id(2)

        @pl.when(k == 0)
        def _init():
            acc_ref[...] = jnp.zeros_like(acc_ref)

        window = jnp.concatenate([xa_ref[...], xb_ref[...]], axis=1)
        acc = acc_ref[...]
        for s, d in enumerate(offsets):        # static unroll over kh*kw taps
            acc = acc + jnp.dot(w_ref[s], window[:, d:d + tm],
                                preferred_element_type=jnp.float32)
        acc_ref[...] = acc

        @pl.when(k == pl.num_programs(2) - 1)
        def _finalize():
            y = acc_ref[...] * scale_ref[...] + bias_ref[...]   # f32 epilogue
            o_ref[...] = jnp.maximum(y, 0.0).astype(o_ref.dtype)

    return kernel


def conv_bn_act(x, weight, gamma, beta, running_mean, running_var,
                stride=1, eps=1e-5, tile_m=1024, co_block=128, ci_block=256,
                out_dtype=jnp.bfloat16):
    """Conv2d(pad=k//2, bias=False) -> BatchNorm2d (inference) -> ReLU.

    x: (N, C_in, H, W) NCHW; weight: (C_out, C_in, kh, kw) OIHW.  Returns NCHW.
    """
    n, c_in, h, w = x.shape
    c_out, _, kh, kw = weight.shape
    pad_h, pad_w = kh // 2, kw // 2
    h_pad, w_pad = h + 2 * pad_h, w + 2 * pad_w
    oh = (h + 2 * pad_h - kh) // stride + 1
    ow = (w + 2 * pad_w - kw) // stride + 1

    # ---- channel blocking ---------------------------------------------------
    ci_blk = min(_round_up(c_in, 8), ci_block)
    c_in_p = _round_up(c_in, ci_blk)
    co_blk = min(_round_up(c_out, 8), co_block)
    c_out_p = _round_up(c_out, co_blk)

    # ---- flat-M tiling ------------------------------------------------------
    max_d = (kh - 1) * w_pad + (kw - 1)          # largest tap shift
    halo = _round_up(max(max_d, 1), 128)
    m_flat = n * h_pad * w_pad
    m_min = _round_up(m_flat, halo)
    tile_m = _round_up(min(max(tile_m, halo), m_min), halo)
    target_steps = max(1, min(4, m_min // halo))  # keep >=2 M steps (megacore)
    tile_m = min(tile_m, _round_up(_cdiv(m_min, target_steps), halo))
    m_pad = _round_up(m_flat, tile_m)
    m_tiles = m_pad // tile_m
    offsets = tuple(ky * w_pad + kx for ky in range(kh) for kx in range(kw))

    # ---- input: bf16 first, channel-major, spatial flattened, halo tail -----
    x_cm = jnp.transpose(x.astype(jnp.bfloat16), (1, 0, 2, 3))     # C,N,H,W
    x_cm = jnp.pad(x_cm, ((0, c_in_p - c_in), (0, 0),
                          (pad_h, pad_h), (pad_w, pad_w)))
    x_cm = x_cm.reshape(c_in_p, m_flat)
    x_cm = jnp.pad(x_cm, ((0, 0), (0, m_pad + halo - m_flat)))

    # ---- weights per tap (unscaled bf16); BN as f32 scale/bias epilogue -----
    w_taps = jnp.transpose(weight, (2, 3, 0, 1)).reshape(kh * kw, c_out, c_in)
    w_taps = jnp.pad(w_taps, ((0, 0), (0, c_out_p - c_out), (0, c_in_p - c_in)))
    w_taps = w_taps.astype(jnp.bfloat16)

    scale = (gamma.astype(jnp.float32)
             / jnp.sqrt(running_var.astype(jnp.float32) + eps))
    bias = beta.astype(jnp.float32) - running_mean.astype(jnp.float32) * scale
    scale2d = jnp.pad(scale, (0, c_out_p - c_out)).reshape(c_out_p, 1)
    bias2d = jnp.pad(bias, (0, c_out_p - c_out)).reshape(c_out_p, 1)

    # ---- grid / specs -------------------------------------------------------
    grid = (c_out_p // co_blk, m_tiles, c_in_p // ci_blk)
    tm_units = tile_m // halo
    kernel = _make_kernel(offsets, tile_m)

    in_specs = [
        pl.BlockSpec((kh * kw, co_blk, ci_blk), lambda co, i, k: (0, co, k)),
        pl.BlockSpec((co_blk, 1), lambda co, i, k: (co, 0)),
        pl.BlockSpec((co_blk, 1), lambda co, i, k: (co, 0)),
        pl.BlockSpec((ci_blk, tile_m), lambda co, i, k: (k, i)),
        pl.BlockSpec((ci_blk, halo), lambda co, i, k: (k, (i + 1) * tm_units)),
    ]
    out_specs = pl.BlockSpec((co_blk, tile_m), lambda co, i, k: (co, i))

    # ---- generation-aware VMEM budget (v7x: 64 MiB/TC vs 128 MiB v5e/v6e) ---
    blk_bytes = (kh * kw * co_blk * ci_blk * 2 + 2 * co_blk * 4
                 + ci_blk * (tile_m + halo) * 2 + co_blk * tile_m * 2)
    need = 2 * blk_bytes + co_blk * tile_m * 4           # dbl-buffer + f32 acc
    try:
        vmem_cap = int(pltpu.get_tpu_info().vmem_capacity_bytes)
    except Exception:
        vmem_cap = 64 << 20                              # smallest (v7x per-TC)
    vmem_limit = int(min(max(need + (4 << 20), 16 << 20), int(vmem_cap * 0.55)))
    vmem_limit = max(vmem_limit, need + (1 << 20))

    cost = pl.CostEstimate(
        flops=2 * m_pad * kh * kw * c_in_p * c_out_p,
        transcendentals=0,
        bytes_accessed=int(x_cm.size * 2 + w_taps.size * 2
                           + (scale2d.size + bias2d.size) * 4
                           + c_out_p * m_pad * jnp.dtype(out_dtype).itemsize))

    out_flat = pl.pallas_call(
        kernel,
        out_shape=jax.ShapeDtypeStruct((c_out_p, m_pad), out_dtype),
        grid_spec=pltpu.PrefetchScalarGridSpec(
            num_scalar_prefetch=0,
            grid=grid,
            in_specs=in_specs,
            out_specs=out_specs,
            scratch_shapes=[pltpu.VMEM((co_blk, tile_m), jnp.float32)]),
        compiler_params=pltpu.CompilerParams(
            dimension_semantics=("parallel", "parallel", "arbitrary"),
            vmem_limit_bytes=vmem_limit),
        cost_estimate=cost,
    )(w_taps, scale2d, bias2d, x_cm, x_cm)

    # ---- extract valid flat positions; transpose done on narrow bf16 data ---
    out = out_flat[:c_out, :m_flat].reshape(c_out, n, h_pad, w_pad)
    # TODO(synk): stride > 1 computes the dense (stride=1) result and subsamples
    # here (stride^2 extra work); a strided-gather input path would remove it.
    out = lax.slice(out, (0, 0, 0, 0),
                    (c_out, n, (oh - 1) * stride + 1, (ow - 1) * stride + 1),
                    (1, 1, stride, stride))
    return jnp.transpose(out, (1, 0, 2, 3))              # N, C_out, OH, OW


def _reference(x, weight, gamma, beta, running_mean, running_var,
               stride=1, eps=1e-5):
    pad = weight.shape[2] // 2
    y = lax.conv_general_dilated(
        x.astype(jnp.float32), weight.astype(jnp.float32),
        window_strides=(stride, stride),
        padding=[(pad, pad), (pad, pad)],
        dimension_numbers=('NCHW', 'OIHW', 'NCHW'))
    scale = gamma / jnp.sqrt(running_var + eps)
    bias = beta - running_mean * scale
    y = y * scale[None, :, None, None] + bias[None, :, None, None]
    return jnp.maximum(y, 0.0)


if __name__ == "__main__":
    key = jax.random.PRNGKey(0)
    k_x, k_w, k_g, k_b, k_m, k_v = jax.random.split(key, 6)

    # small shapes consistent with the module
    n, in_chs, out_chs, hw, kernel_size, stride = 2, 4, 8, 16, 3, 1

    x = jax.random.normal(k_x, (n, in_chs, hw, hw), dtype=jnp.float32)
    fan_in = in_chs * kernel_size * kernel_size
    weight = jax.random.normal(
        k_w, (out_chs, in_chs, kernel_size, kernel_size),
        dtype=jnp.float32) * (1.0 / math.sqrt(fan_in))
    gamma = 1.0 + 0.1 * jax.random.normal(k_g, (out_chs,), dtype=jnp.float32)
    beta = 0.1 * jax.random.normal(k_b, (out_chs,), dtype=jnp.float32)
    running_mean = 0.1 * jax.random.normal(k_m, (out_chs,), dtype=jnp.float32)
    running_var = jnp.abs(1.0 + 0.1 * jax.random.normal(
        k_v, (out_chs,), dtype=jnp.float32))

    out = conv_bn_act(x, weight, gamma, beta, running_mean, running_var,
                      stride=stride)
    out = jax.block_until_ready(out)

    ref = _reference(x, weight, gamma, beta, running_mean, running_var,
                     stride=stride)
    assert out.shape == (n, out_chs, hw, hw), out.shape
    # bf16 end-to-end HBM path (input/weights/output), f32 accumulation
    err = float(jnp.max(jnp.abs(out.astype(jnp.float32) - ref)))
    assert err < 1e-1, err

    print("KERNEL_OK")
</pallas_src>

<mosaic_0001>
module attributes {stable_mosaic.version = 11 : i64} {
  func.func @kernel(%arg0: i32, %arg1: i32, %arg2: i32, %arg3: memref<9x8x8xbf16, #tpu.memory_space<vmem>>, %arg4: memref<8x1xf32, #tpu.memory_space<vmem>>, %arg5: memref<8x1xf32, #tpu.memory_space<vmem>>, %arg6: memref<8x256xbf16, #tpu.memory_space<vmem>>, %arg7: memref<8x128xbf16, #tpu.memory_space<vmem>>, %arg8: memref<8x256xbf16, #tpu.memory_space<vmem>>, %arg9: memref<8x256xf32, #tpu.memory_space<vmem>>) attributes {dimension_semantics = [#tpu.dimension_semantics<parallel>, #tpu.dimension_semantics<parallel>, #tpu.dimension_semantics<arbitrary>], iteration_bounds = array<i64: 1, 3, 1>, scalar_prefetch = 0 : i64, scratch_operands = 1 : i64, tpu.core_type = #tpu.core_type<tc>, window_params = [{transform_indices = @transform_0, window_bounds = array<i64: 9, 8, 8>}, {transform_indices = @transform_1, window_bounds = array<i64: 8, 1>}, {transform_indices = @transform_2, window_bounds = array<i64: 8, 1>}, {transform_indices = @transform_3, window_bounds = array<i64: 8, 256>}, {transform_indices = @transform_4, window_bounds = array<i64: 8, 128>}, {transform_indices = @transform_5, window_bounds = array<i64: 8, 256>}]} {
    %c0_i32 = arith.constant 0 : i32
    %0 = arith.cmpi eq, %arg2, %c0_i32 : i32
    %1 = arith.extui %0 : i1 to i32
    %c0_i32_0 = arith.constant 0 : i32
    %2 = arith.cmpi ne, %1, %c0_i32_0 : i32
    scf.if %2 {
      %cst_37 = arith.constant 0.000000e+00 : f32
      %56 = vector.broadcast %cst_37 : f32 to vector<8x256xf32>
      %c0_38 = arith.constant 0 : index
      %c0_39 = arith.constant 0 : index
      %57 = vector.load %arg9[%c0_38, %c0_39] : memref<8x256xf32, #tpu.memory_space<vmem>>, vector<8x256xf32>
      tpu.vector_store %arg9[%c0_38, %c0_39], %56 {strides = array<i32>} : memref<8x256xf32, #tpu.memory_space<vmem>>, vector<8x256xf32>,
    } else {
    }
    %c0 = arith.constant 0 : index
    %c0_1 = arith.constant 0 : index
    %3 = vector.load %arg6[%c0, %c0_1] : memref<8x256xbf16, #tpu.memory_space<vmem>>, vector<8x256xbf16>
    %c0_2 = arith.constant 0 : index
    %c0_3 = arith.constant 0 : index
    %4 = vector.load %arg7[%c0_2, %c0_3] : memref<8x128xbf16, #tpu.memory_space<vmem>>, vector<8x128xbf16>
    %5 = tpu.concatenate %3, %4 in 1 : vector<8x256xbf16>, vector<8x128xbf16> -> vector<8x384xbf16>
    %c0_4 = arith.constant 0 : index
    %c0_5 = arith.constant 0 : index
    %6 = vector.load %arg9[%c0_4, %c0_5] : memref<8x256xf32, #tpu.memory_space<vmem>>, vector<8x256xf32>
    %c0_6 = arith.constant 0 : index
    %c0_7 = arith.constant 0 : index
    %c0_8 = arith.constant 0 : index
    %7 = vector.load %arg3[%c0_6, %c0_7, %c0_8] : memref<9x8x8xbf16, #tpu.memory_space<vmem>>, vector<1x8x8xbf16>
    %8 = vector.shape_cast %7 : vector<1x8x8xbf16> to vector<8x8xbf16>
    %9 = vector.extract_strided_slice %5 {offsets = [0, 0], sizes = [8, 256], strides = [1, 1]} : vector<8x384xbf16> to vector<8x256xbf16>
    %cst = arith.constant dense<0.000000e+00> : vector<8x256xf32>
    %10 = tpu.matmul %8, %9, %cst {dimension_numbers = #tpu.dot_dimension_numbers<[1], [0], [0], [1], [0, 0, 1, 1], [], []>} : vector<8x8xbf16>, vector<8x256xbf16>, vector<8x256xf32> -> vector<8x256xf32>
    %11 = arith.addf %6, %10 : vector<8x256xf32>
    %c1 = arith.constant 1 : index
    %c0_9 = arith.constant 0 : index
    %c0_10 = arith.constant 0 : index
    %12 = vector.load %arg3[%c1, %c0_9, %c0_10] : memref<9x8x8xbf16, #tpu.memory_space<vmem>>, vector<1x8x8xbf16>
    %13 = vector.shape_cast %12 : vector<1x8x8xbf16> to vector<8x8xbf16>
    %14 = vector.extract_strided_slice %5 {offsets = [0, 1], sizes = [8, 256], strides = [1, 1]} : vector<8x384xbf16> to vector<8x256xbf16>
    %cst_11 = arith.constant dense<0.000000e+00> : vector<8x256xf32>
    %15 = tpu.matmul %13, %14, %cst_11 {dimension_numbers = #tpu.dot_dimension_numbers<[1], [0], [0], [1], [0, 0, 1, 1], [], []>} : vector<8x8xbf16>, vector<8x256xbf16>, vector<8x256xf32> -> vector<8x256xf32>
    %16 = arith.addf %11, %15 : vector<8x256xf32>
    %c2 = arith.constant 2 : index
    %c0_12 = arith.constant 0 : index
    %c0_13 = arith.constant 0 : index
    %17 = vector.load %arg3[%c2, %c0_12, %c0_13] : memref<9x8x8xbf16, #tpu.memory_space<vmem>>, vector<1x8x8xbf16>
    %18 = vector.shape_cast %17 : vector<1x8x8xbf16> to vector<8x8xbf16>
    %19 = vector.extract_strided_slice %5 {offsets = [0, 2], sizes = [8, 256], strides = [1, 1]} : vector<8x384xbf16> to vector<8x256xbf16>
    %cst_14 = arith.constant dense<0.000000e+00> : vector<8x256xf32>
    %20 = tpu.matmul %18, %19, %cst_14 {dimension_numbers = #tpu.dot_dimension_numbers<[1], [0], [0], [1], [0, 0, 1, 1], [], []>} : vector<8x8xbf16>, vector<8x256xbf16>, vector<8x256xf32> -> vector<8x256xf32>
    %21 = arith.addf %16, %20 : vector<8x256xf32>
    %c3 = arith.constant 3 : index
    %c0_15 = arith.constant 0 : index
    %c0_16 = arith.constant 0 : index
    %22 = vector.load %arg3[%c3, %c0_15, %c0_16] : memref<9x8x8xbf16, #tpu.memory_space<vmem>>, vector<1x8x8xbf16>
    %23 = vector.shape_cast %22 : vector<1x8x8xbf16> to vector<8x8xbf16>
    %24 = vector.extract_strided_slice %5 {offsets = [0, 18], sizes = [8, 256], strides = [1, 1]} : vector<8x384xbf16> to vector<8x256xbf16>
    %cst_17 = arith.constant dense<0.000000e+00> : vector<8x256xf32>
    %25 = tpu.matmul %23, %24, %cst_17 {dimension_numbers = #tpu.dot_dimension_numbers<[1], [0], [0], [1], [0, 0, 1, 1], [], []>} : vector<8x8xbf16>, vector<8x256xbf16>, vector<8x256xf32> -> vector<8x256xf32>
    %26 = arith.addf %21, %25 : vector<8x256xf32>
    %c4 = arith.constant 4 : index
    %c0_18 = arith.constant 0 : index
    %c0_19 = arith.constant 0 : index
    %27 = vector.load %arg3[%c4, %c0_18, %c0_19] : memref<9x8x8xbf16, #tpu.memory_space<vmem>>, vector<1x8x8xbf16>
    %28 = vector.shape_cast %27 : vector<1x8x8xbf16> to vector<8x8xbf16>
    %29 = vector.extract_strided_slice %5 {offsets = [0, 19], sizes = [8, 256], strides = [1, 1]} : vector<8x384xbf16> to vector<8x256xbf16>
    %cst_20 = arith.constant dense<0.000000e+00> : vector<8x256xf32>
    %30 = tpu.matmul %28, %29, %cst_20 {dimension_numbers = #tpu.dot_dimension_numbers<[1], [0], [0], [1], [0, 0, 1, 1], [], []>} : vector<8x8xbf16>, vector<8x256xbf16>, vector<8x256xf32> -> vector<8x256xf32>
    %31 = arith.addf %26, %30 : vector<8x256xf32>
    %c5 = arith.constant 5 : index
    %c0_21 = arith.constant 0 : index
    %c0_22 = arith.constant 0 : index
    %32 = vector.load %arg3[%c5, %c0_21, %c0_22] : memref<9x8x8xbf16, #tpu.memory_space<vmem>>, vector<1x8x8xbf16>
    %33 = vector.shape_cast %32 : vector<1x8x8xbf16> to vector<8x8xbf16>
    %34 = vector.extract_strided_slice %5 {offsets = [0, 20], sizes = [8, 256], strides = [1, 1]} : vector<8x384xbf16> to vector<8x256xbf16>
    %cst_23 = arith.constant dense<0.000000e+00> : vector<8x256xf32>
    %35 = tpu.matmul %33, %34, %cst_23 {dimension_numbers = #tpu.dot_dimension_numbers<[1], [0], [0], [1], [0, 0, 1, 1], [], []>} : vector<8x8xbf16>, vector<8x256xbf16>, vector<8x256xf32> -> vector<8x256xf32>
    %36 = arith.addf %31, %35 : vector<8x256xf32>
    %c6 = arith.constant 6 : index
    %c0_24 = arith.constant 0 : index
    %c0_25 = arith.constant 0 : index
    %37 = vector.load %arg3[%c6, %c0_24, %c0_25] : memref<9x8x8xbf16, #tpu.memory_space<vmem>>, vector<1x8x8xbf16>
    %38 = vector.shape_cast %37 : vector<1x8x8xbf16> to vector<8x8xbf16>
    %39 = vector.extract_strided_slice %5 {offsets = [0, 36], sizes = [8, 256], strides = [1, 1]} : vector<8x384xbf16> to vector<8x256xbf16>
    %cst_26 = arith.constant dense<0.000000e+00> : vector<8x256xf32>
    %40 = tpu.matmul %38, %39, %cst_26 {dimension_numbers = #tpu.dot_dimension_numbers<[1], [0], [0], [1], [0, 0, 1, 1], [], []>} : vector<8x8xbf16>, vector<8x256xbf16>, vector<8x256xf32> -> vector<8x256xf32>
    %41 = arith.addf %36, %40 : vector<8x256xf32>
    %c7 = arith.constant 7 : index
    %c0_27 = arith.constant 0 : index
    %c0_28 = arith.constant 0 : index
    %42 = vector.load %arg3[%c7, %c0_27, %c0_28] : memref<9x8x8xbf16, #tpu.memory_space<vmem>>, vector<1x8x8xbf16>
    %43 = vector.shape_cast %42 : vector<1x8x8xbf16> to vector<8x8xbf16>
    %44 = vector.extract_strided_slice %5 {offsets = [0, 37], sizes = [8, 256], strides = [1, 1]} : vector<8x384xbf16> to vector<8x256xbf16>
    %cst_29 = arith.constant dense<0.000000e+00> : vector<8x256xf32>
    %45 = tpu.matmul %43, %44, %cst_29 {dimension_numbers = #tpu.dot_dimension_numbers<[1], [0], [0], [1], [0, 0, 1, 1], [], []>} : vector<8x8xbf16>, vector<8x256xbf16>, vector<8x256xf32> -> vector<8x256xf32>
    %46 = arith.addf %41, %45 : vector<8x256xf32>
    %c8 = arith.constant 8 : index
    %c0_30 = arith.constant 0 : index
    %c0_31 = arith.constant 0 : index
    %47 = vector.load %arg3[%c8, %c0_30, %c0_31] : memref<9x8x8xbf16, #tpu.memory_space<vmem>>, vector<1x8x8xbf16>
    %48 = vector.shape_cast %47 : vector<1x8x8xbf16> to vector<8x8xbf16>
    %49 = vector.extract_strided_slice %5 {offsets = [0, 38], sizes = [8, 256], strides = [1, 1]} : vector<8x384xbf16> to vector<8x256xbf16>
    %cst_32 = arith.constant dense<0.000000e+00> : vector<8x256xf32>
    %50 = tpu.matmul %48, %49, %cst_32 {dimension_numbers = #tpu.dot_dimension_numbers<[1], [0], [0], [1], [0, 0, 1, 1], [], []>} : vector<8x8xbf16>, vector<8x256xbf16>, vector<8x256xf32> -> vector<8x256xf32>
    %51 = arith.addf %46, %50 : vector<8x256xf32>
    %c0_33 = arith.constant 0 : index
    %c0_34 = arith.constant 0 : index
    %52 = vector.load %arg9[%c0_33, %c0_34] : memref<8x256xf32, #tpu.memory_space<vmem>>, vector<8x256xf32>
    tpu.vector_store %arg9[%c0_33, %c0_34], %51 {strides = array<i32>} : memref<8x256xf32, #tpu.memory_space<vmem>>, vector<8x256xf32>,
    %c0_i32_35 = arith.constant 0 : i32
    %53 = arith.cmpi eq, %arg2, %c0_i32_35 : i32
    %54 = arith.extui %53 : i1 to i32
    %c0_i32_36 = arith.constant 0 : i32
    %55 = arith.cmpi ne, %54, %c0_i32_36 : i32
    scf.if %55 {
      %c0_37 = arith.constant 0 : index
      %c0_38 = arith.constant 0 : index
      %56 = vector.load %arg9[%c0_37, %c0_38] : memref<8x256xf32, #tpu.memory_space<vmem>>, vector<8x256xf32>
      %c0_39 = arith.constant 0 : index
      %c0_40 = arith.constant 0 : index
      %57 = vector.load %arg4[%c0_39, %c0_40] : memref<8x1xf32, #tpu.memory_space<vmem>>, vector<8x1xf32>
      %58 = vector.broadcast %57 : vector<8x1xf32> to vector<8x256xf32>
      %59 = arith.mulf %56, %58 : vector<8x256xf32>
      %c0_41 = arith.constant 0 : index
      %c0_42 = arith.constant 0 : index
      %60 = vector.load %arg5[%c0_41, %c0_42] : memref<8x1xf32, #tpu.memory_space<vmem>>, vector<8x1xf32>
      %61 = vector.broadcast %60 : vector<8x1xf32> to vector<8x256xf32>
      %62 = arith.addf %59, %61 : vector<8x256xf32>
      %cst_43 = arith.constant 0.000000e+00 : f32
      %63 = vector.broadcast %cst_43 : f32 to vector<8x256xf32>
      %64 = arith.maximumf %62, %63 : vector<8x256xf32>
      %65 = arith.truncf %64 : vector<8x256xf32> to vector<8x256xbf16>
      %c0_44 = arith.constant 0 : index
      %c0_45 = arith.constant 0 : index
      %66 = vector.load %arg8[%c0_44, %c0_45] : memref<8x256xbf16, #tpu.memory_space<vmem>>, vector<8x256xbf16>
      tpu.vector_store %arg8[%c0_44, %c0_45], %65 {strides = array<i32>} : memref<8x256xbf16, #tpu.memory_space<vmem>>, vector<8x256xbf16>,
    } else {
    }
    return
  }
  func.func @transform_0(%arg0: i32, %arg1: i32, %arg2: i32) -> (i32, i32, i32) {
    %c0_i32 = arith.constant 0 : i32
    %c0_i32_0 = arith.constant 0 : i32
    return %c0_i32, %arg0, %arg2 : i32, i32, i32
  }
  func.func @transform_1(%arg0: i32, %arg1: i32, %arg2: i32) -> (i32, i32) {
    %c0_i32 = arith.constant 0 : i32
    %c0_i32_0 = arith.constant 0 : i32
    return %arg0, %c0_i32 : i32, i32
  }
  func.func @transform_2(%arg0: i32, %arg1: i32, %arg2: i32) -> (i32, i32) {
    %c0_i32 = arith.constant 0 : i32
    %c0_i32_0 = arith.constant 0 : i32
    return %arg0, %c0_i32 : i32, i32
  }
  func.func @transform_3(%arg0: i32, %arg1: i32, %arg2: i32) -> (i32, i32) {
    %c0_i32 = arith.constant 0 : i32
    return %arg2, %arg1 : i32, i32
  }
  func.func @transform_4(%arg0: i32, %arg1: i32, %arg2: i32) -> (i32, i32) {
    %c1_i32 = arith.constant 1 : i32
    %0 = arith.addi %arg1, %c1_i32 : i32
    %c2_i32 = arith.constant 2 : i32
    %1 = arith.muli %0, %c2_i32 : i32
    %c0_i32 = arith.constant 0 : i32
    return %arg2, %1 : i32, i32
  }
  func.func @transform_5(%arg0: i32, %arg1: i32, %arg2: i32) -> (i32, i32) {
    %c0_i32 = arith.constant 0 : i32
    return %arg0, %arg1 : i32, i32
  }
}

</mosaic_0001>

<bundles_post_ra>
// kernel: tpu_custom_call.1
= control target key start
LH: loop header
LB: loop body
LE: loop exit
PB: predicated region body
PF: predicated region fallthrough
CT: control target
= control target key end

     0   :  { %10 = vsyncpa [#allocation4], 0  ;;  %s1620_s0 = inlined_call_operand.vmem [shape: bf16[9,8,8], index: 0, kind: input, shape index: {}]   ;;  %s1621_s1 = inlined_call_operand.vmem [shape: f32[8,1], index: 1, kind: input, shape index: {}]   ;;  %s1622_s2 = inlined_call_operand.vmem [shape: f32[8,1], index: 2, kind: input, shape index: {}]   ;;  %s1623_s3 = inlined_call_operand.vmem [shape: bf16[8,896], index: 3, kind: input, shape index: {}]   ;;  %s1624_s4 = inlined_call_operand.vmem [shape: bf16[8,896], index: 4, kind: input, shape index: {}]   ;;  %s1625_s5 = inlined_call_operand.hbm [shape: bf16[8,768], index: 5, kind: output, shape index: {}]  }
   0x1   :  { %12 = vsyncpa [#allocation4 + $0x1], 0  ;;  %s1435_s18 = smov 0   ;;  %s1437_s19 = smov 0  }
   0x2   :  { %s1439_s20 = smov 0   ;;  %s1441_s21 = smov 0  }
   0x3   :  { %s1443_s22 = smov 0   ;;  %s1445_s23 = smov 0  }
   0x4 LB: > { %s1160_s24 = sadd.s32 4294967295, %s1393_s23   ;;  %s1161_s25 = sadd.s32 4294967294, %s1393_s23   ;;  %s1393_s23 = sphi %s1445_s23, %s18_s23   ;;  %s1389_s22 = sphi %s1443_s22, %s1632_s22   ;;  %s1385_s21 = sphi %s1441_s21, %s1631_s21   ;;  %s1381_s20 = sphi %s1439_s20, %s1630_s20   ;;  %s1377_s19 = sphi %s1437_s19, %s1629_s19   ;;  %s1373_s18 = sphi %s1435_s18, %s1628_s18  }
   0x5   : > { %s33_s26 = sadd.s32 1, %s1389_s22  ;;  %s186_s27 = sadd.s32 1, %s1381_s20 }
   0x6   : > { %p35_p0 = scmp.ge.s32.totalorder %s33_s26, 3  ;;  %p196_p1 = scmp.ne.s32.totalorder %s1381_s20, %s1377_s19 }
   0x7   : > { %p197_p2 = scmp.eq.s32.totalorder %s1160_s24, 2  ;;  %p202_p3 = scmp.ne.s32.totalorder %s1377_s19, %s1373_s18 }
   0x8   : > { %s1634_s26 = smov (%p35_p0, %s33_s26), 0  ;;  %p203_p5 = scmp.eq.s32.totalorder %s1161_s25, 2 }
   0x9   : > { %p1475_p4 = por %p197_p2, %p196_p1  ;;  %s182_s29 = ssub.s32 %s1389_s22, %s1634_s26 }
   0xa   : > { %p1169_p6 = scmp.ge.s32.totalorder %s1393_s23, 1  ;;  %p184_p7 = scmp.eq.s32.totalorder %s182_s29, 0 }
   0xb   : > { %p1482_p8 = por %p203_p5, %p202_p3  ;;  %p281_p9 = scmp.lt.s32.totalorder %s1393_s23, 4 }
   0xc   : > { %s1488_s6 = scalar_select %p184_p7, %s1381_s20, %s186_s27  }
   0xd   : > { %p282_p10 = pnand %p1169_p6, %p281_p9 }
   0xe   : > { %s1171_s7 = sshll.u32 (!%p282_p10), %s1385_s21, 1  ;;  %v1395_v0 = vmov (!%p282_p10), 0   ;;  %vm409_vm0 = vcmask (!%p282_p10), 1043456   ;;  %s1396_s17 = smov (!%p282_p10), 109   ;;  %v404_v6 = vld [vmem:[%s1620_s0] sm:$0xf] (!%p282_p10) }
   0xf   : > { %285 = sbr.rel (%p282_p10) target bundleno = 437 (0x1b5), region = 40  ;;  %s1214_s8 = sadd.s32 (!%p282_p10), 2, %s1171_s7  ;;  %448 = vmatprep.mubr.bf16.mxu1 (!%p282_p10), %v1395_v0  ;;  %701 = vmatprep.mubr.bf16.mxu0 (!%p282_p10), %v1395_v0  ;;  %vm405_vm1 = vcmask (!%p282_p10), 64512   ;;  %v979_v7 = vld [vmem:[%s1622_s2] sm:$0xff] (!%p282_p10)  ;;  %vm657_vm2 = vcmask (!%p282_p10), 891904   ;;  %vm720_vm3 = vcmask (!%p282_p10), 883712  }
  0x10   : > { %p364_p11 = scmp.lt.s32.totalorder (!%p282_p10), %s1171_s7, 6  ;;  %p379_p12 = scmp.lt.s32.totalorder (!%p282_p10), %s1214_s8, 6  ;;  %1311 = vset.pattern.permute.xlu0 (!%p282_p10), %v1395_v0  ;;  %1312 = vset.pattern.permute.xlu1 (!%p282_p10), %v1395_v0  ;;  %v971_v8 = vld [vmem:[%s1621_s1] sm:$0xff] (!%p282_p10)  ;;  %v1188_v17 = vld [vmem:[%s1620_s0 + $0x10] sm:$0xf] (!%p282_p10)  ;;  %vm468_vm4 = vcmask (!%p282_p10), 1039360  }
  0x11   : > { %s1397_s27 = smov (!%p282_p10), 108   ;;  %s1398_s29 = smov (!%p282_p10), 127   ;;  %vm783_vm5 = vcmask (!%p282_p10), 752640   ;;  %v1179_v30 = vld [vmem:[%s1620_s0 + $0x4] sm:$0xf] (!%p282_p10)  ;;  %vm531_vm6 = vcmask (!%p282_p10), 1031168  }
  0x12   : > { %s1403_s11 = smov (!%p282_p10), 90   ;;  %v1191_v31 = vld [vmem:[%s1620_s0 + $0x14] sm:$0xf] (!%p282_p10)  ;;  %vm846_vm7 = vcmask (!%p282_p10), 744448   ;;  %v1182_v44 = vld [vmem:[%s1620_s0 + $0x8] sm:$0xf] (!%p282_p10) }
  0x13   : > { %v1194_v45 = vld [vmem:[%s1620_s0 + $0x18] sm:$0xf] (!%p282_p10)  ;;  %vm594_vm8 = vcmask (!%p282_p10), 900096   ;;  %vm909_vm9 = vcmask (!%p282_p10), 736256   ;;  %v1185_v58 = vld [vmem:[%s1620_s0 + $0xc] sm:$0xf] (!%p282_p10) }
  0x14   : > { %v1197_v59 = vld [vmem:[%s1620_s0 + $0x1c] sm:$0xf] (!%p282_p10)  ;;  %s1216_s25 = sshll.u32 (!%p282_p10), %s1385_s21, 7  ;;  %s1404_s21 = smov (!%p282_p10), [#allocation3]  }
  0x15   : > { %s1319_s12 = sshll.u32 (!%p282_p10), %s1404_s21, 4  ;;  %s1320_s12 = int_to_ptr.vmem [resolvable:$false] %s1319_s12 }
  0x16   : > { %s1636_s7 = smov (!%p364_p11, %s1171_s7), 6  ;;  %s1638_s8 = smov (!%p379_p12, %s1214_s8), 6 }
  0x17   : > { %s1172_s9 = sshll.u32 %s1636_s7, 2  ;;  %s1174_s10 = sshll.u32 %s1638_s8, 2 }
  0x18   : > { %s369_s13 = scalar_lea.vmem %s1623_s3, %s1172_s9  ;;  %s384_s16 = scalar_lea.vmem %s1624_s4, %s1174_s10 }
  0x19   : > { %v395_v1 = vld [vmem:[%s369_s13] sm:$0xff]  ;;  %s1399_s7 = smov 92   ;;  %s1400_s8 = smov 126  }
  0x1a   : > { %v396_v2 = vld [vmem:[%s384_s16] sm:$0xf]  ;;  %v1175_v3 = vcombine.low %v395_v1, %v395_v1  ;;  %v1176_v4 = vcombine.high %v395_v1, %v395_v1  ;;  %s1401_s9 = smov 91   ;;  %s1402_s10 = smov 110  }
  0x1b   : > { %655 = vrot.lane.b32.xlu1 %v396_v2, %s1396_s17  ;;  %v1200_v1 = vld [vmem:[%s1620_s0 + $0x20] sm:$0xf]  ;;  %s1321_s13 = scalar_lea.vmem %s1320_s12, 256 }
  0x1c   : > { %651 = vrot.lane.b32.xlu0 %v1175_v3, %s1396_s17  ;;  %1177 = vmatprep.subr.msk.bf16.mxu1 %vm409_vm0, %v1176_v4  ;;  %v411_v5 = vsel %vm409_vm0, %v1175_v3, 0 }
  0x1d   : > { %417 = vmatpush1.bf16.msra.mxu1 %v411_v5 }
  0x1f   : > { %718 = vrot.lane.b32.xlu1 %v396_v2, %s1397_s27 }
  0x20   : > { %653 = vrot.lane.b32.xlu0 %v1176_v4, %s1396_s17  ;;  %1178 = vmatmul.mubr.msk.bf16.vlgmr.msra.gmra.mrb[0].mxu1 %vm405_vm1, %v404_v6  ;;  %s339_s17 = sand.u32 1, %s1377_s19  }
  0x21   : > { %512 = vmatprep.mubr.bf16.mxu1 %v1395_v0  ;;  %s1170_s24 = sshll.u32 %s339_s17, 3 }
  0x23   : > { %714 = vrot.lane.b32.xlu1 %v1175_v3, %s1397_s27 }
  0x24   : > { %716 = vrot.lane.b32.xlu0 %v1176_v4, %s1397_s27  ;;  %s341_s27 = scalar_lea.vmem [#allocation3], %s1170_s24 }
  0x27   : > { %464 = vrot.lane.b32.xlu1 %v1176_v4, %s1398_s29 }
  0x28   : > { %462 = vrot.lane.b32.xlu0 %v1175_v3, %s1398_s29 }
  0x2b   : > { %777 = vrot.lane.b32.xlu1 %v1175_v3, %s1399_s7 }
  0x2c   : > { %466 = vrot.lane.b32.xlu0 %v396_v2, %s1398_s29  ;;  %s1015_s29 = sshll.u32 %s341_s27, 4  ;;  %s1575_s29 = int_to_ptr.vmem [resolvable:$true] %s1015_s29 }
  0x2d   : > { %p1322_p2 = scmp.lt.s32.totalorder %s1575_s29, %s1320_s12 }
  0x2f   : > { %781 = vrot.lane.b32.xlu1 %v396_v2, %s1399_s7 }
  0x30   : > { %779 = vrot.lane.b32.xlu0 %v1176_v4, %s1399_s7 }
  0x33   : > { %527 = vrot.lane.b32.xlu1 %v1176_v4, %s1400_s8 }
  0x34   : > { %525 = vrot.lane.b32.xlu0 %v1175_v3, %s1400_s8 }
  0x37   : > { %840 = vrot.lane.b32.xlu1 %v1175_v3, %s1401_s9 }
  0x38   : > { %529 = vrot.lane.b32.xlu0 %v396_v2, %s1400_s8 }
  0x3b   : > { %844 = vrot.lane.b32.xlu1 %v396_v2, %s1401_s9 }
  0x3c   : > { %842 = vrot.lane.b32.xlu0 %v1176_v4, %s1401_s9  ;;  %s1573_s9 = scalar_lea.hbm %s1625_s5, %s1216_s25 }
  0x3f   : > { %590 = vrot.lane.b32.xlu1 %v1176_v4, %s1402_s10 }
  0x40   : > { %588 = vrot.lane.b32.xlu0 %v1175_v3, %s1402_s10 }
  0x43   : > { %903 = vrot.lane.b32.xlu1 %v1175_v3, %s1403_s11 }
  0x44   : > { %592 = vrot.lane.b32.xlu0 %v396_v2, %s1402_s10  ;;  %s999_s10 = scalar_lea.sflag [#allocation4], %s339_s17 }
  0x47   : > { %907 = vrot.lane.b32.xlu1 %v396_v2, %s1403_s11 }
  0x48   : > { %905 = vrot.lane.b32.xlu0 %v1176_v4, %s1403_s11  ;;  %s1315_s11 = scalar_lea.vmem %s1575_s29, 128 }
  0x49   : > { %p1316_p13 = scmp.ne.s32.totalorder %s1575_s29, %s1315_s11  ;;  %p1323_p3 = scmp.lt.s32.totalorder %s1321_s13, %s1315_s11 }
  0x4b   : > { %982 = vperm.xlu1 %1312, %v979_v7   ;;  %p1317_p0 = pnand %p1316_p13, %p1475_p4  ;;  %p1324_p5 = por %p1323_p3, %p1322_p2 }
  0x4c   : > { %974 = vperm.xlu0 %1311, %v971_v8  }
  0x4d   : > { %p1318_p1 = pneg %p1317_p0 }
  0x4f   : > { %p1325_p6 = pnand %p1324_p5, %p1318_p1 }
  0x8d   : > { %v656_v9 = vpop.permute.xlu1 %655 }
  0x8e   : > { %v652_v10 = vpop.permute.xlu0 %651 }
  0x91   : > { %v719_v11 = vpop.permute.xlu1 %718 }
  0x92   : > { %v654_v12 = vpop.permute.xlu0 %653 }
  0x93   : > { %v659_v13 = vsel %vm657_vm2, %v654_v12, %v656_v9  ;;  %v658_v14 = vsel %vm657_vm2, %v652_v10, %v654_v12 }
  0x94   : > { %1189 = vmatprep.subr.msk.bf16.mxu0 %vm409_vm0, %v659_v13  ;;  %v664_v15 = vsel %vm409_vm0, %v658_v14, 0 }
  0x95   : > { %670 = vmatpush1.bf16.msra.mxu0 %v664_v15  ;;  %v715_v16 = vpop.permute.xlu1 %714 }
  0x96   : > { %v717_v18 = vpop.permute.xlu0 %716 }
  0x97   : > { %v721_v19 = vsel %vm720_vm3, %v715_v16, %v717_v18  ;;  %v722_v20 = vsel %vm720_vm3, %v717_v18, %v719_v11 }
  0x98   : > { %v727_v21 = vsel %vm409_vm0, %v721_v19, 0  ;;  %1190 = vmatmul.mubr.msk.bf16.vlgmr.msra.gmra.mrb[0].mxu0 %vm405_vm1, %v1188_v17  ;;  %1192 = vmatprep.subr.msk.bf16.mxu0 %vm409_vm0, %v722_v20 }
  0x99   : > { %733 = vmatpush1.bf16.msra.mxu0 %v727_v21  ;;  %v465_v22 = vpop.permute.xlu1 %464  ;;  %764 = vmatprep.mubr.bf16.mxu0 %v1395_v0 }
  0x9a   : > { %v463_v23 = vpop.permute.xlu0 %462 }
  0x9b   : > { %v469_v24 = vsel %vm468_vm4, %v463_v23, %v465_v22 }
  0x9c   : > { %v475_v26 = vsel %vm409_vm0, %v469_v24, 0 }
  0x9d   : > { %v778_v25 = vpop.permute.xlu1 %777 }
  0x9e   : > { %v467_v27 = vpop.permute.xlu0 %466 }
  0x9f   : > { %v470_v28 = vsel %vm468_vm4, %v465_v22, %v467_v27 }
  0xa0   : > { %1180 = vmatprep.subr.msk.bf16.mxu1 %vm409_vm0, %v470_v28 }
  0xa1   : > { %481 = vmatpush1.bf16.msra.mxu1 %v475_v26  ;;  %v782_v29 = vpop.permute.xlu1 %781 }
  0xa2   : > { %v780_v32 = vpop.permute.xlu0 %779 }
  0xa3   : > { %v784_v33 = vsel %vm783_vm5, %v778_v25, %v780_v32  ;;  %v785_v34 = vsel %vm783_vm5, %v780_v32, %v782_v29 }
  0xa4   : > { %v790_v35 = vsel %vm409_vm0, %v784_v33, 0  ;;  %1181 = vmatmul.mubr.msk.bf16.vlgmr.msra.gmra.mrb[0].mxu1 %vm405_vm1, %v1179_v30  ;;  %1193 = vmatmul.mubr.msk.bf16.vlgmr.msra.gmra.mrb[0].mxu0 %vm405_vm1, %v1191_v31 }
  0xa5   : > { %1195 = vmatprep.subr.msk.bf16.mxu0 %vm409_vm0, %v785_v34  ;;  %v528_v36 = vpop.permute.xlu1 %527  ;;  %575 = vmatprep.mubr.bf16.mxu1 %v1395_v0 }
  0xa6   : > { %796 = vmatpush1.bf16.msra.mxu0 %v790_v35  ;;  %v526_v37 = vpop.permute.xlu0 %525  ;;  %827 = vmatprep.mubr.bf16.mxu0 %v1395_v0 }
  0xa7   : > { %v532_v38 = vsel %vm531_vm6, %v526_v37, %v528_v36 }
  0xa8   : > { %v538_v40 = vsel %vm409_vm0, %v532_v38, 0 }
  0xa9   : > { %v841_v39 = vpop.permute.xlu1 %840 }
  0xaa   : > { %v530_v41 = vpop.permute.xlu0 %529 }
  0xab   : > { %v533_v42 = vsel %vm531_vm6, %v528_v36, %v530_v41 }
  0xac   : > { %1183 = vmatprep.subr.msk.bf16.mxu1 %vm409_vm0, %v533_v42 }
  0xad   : > { %544 = vmatpush1.bf16.msra.mxu1 %v538_v40  ;;  %v845_v43 = vpop.permute.xlu1 %844 }
  0xae   : > { %v843_v46 = vpop.permute.xlu0 %842 }
  0xaf   : > { %v847_v47 = vsel %vm846_vm7, %v841_v39, %v843_v46  ;;  %v848_v48 = vsel %vm846_vm7, %v843_v46, %v845_v43 }
  0xb0   : > { %v853_v49 = vsel %vm409_vm0, %v847_v47, 0  ;;  %1184 = vmatmul.mubr.msk.bf16.vlgmr.msra.gmra.mrb[0].mxu1 %vm405_vm1, %v1182_v44  ;;  %1196 = vmatmul.mubr.msk.bf16.vlgmr.msra.gmra.mrb[0].mxu0 %vm405_vm1, %v1194_v45 }
  0xb1   : > { %1198 = vmatprep.subr.msk.bf16.mxu0 %vm409_vm0, %v848_v48  ;;  %v591_v50 = vpop.permute.xlu1 %590  ;;  %638 = vmatprep.mubr.bf16.mxu1 %v1395_v0 }
  0xb2   : > { %859 = vmatpush1.bf16.msra.mxu0 %v853_v49  ;;  %v589_v51 = vpop.permute.xlu0 %588  ;;  %890 = vmatprep.mubr.bf16.mxu0 %v1395_v0 }
  0xb3   : > { %v595_v52 = vsel %vm594_vm8, %v589_v51, %v591_v50 }
  0xb4   : > { %v601_v54 = vsel %vm409_vm0, %v595_v52, 0 }
  0xb5   : > { %v904_v53 = vpop.permute.xlu1 %903 }
  0xb6   : > { %v593_v55 = vpop.permute.xlu0 %592 }
  0xb7   : > { %v596_v56 = vsel %vm594_vm8, %v591_v50, %v593_v55 }
  0xb8   : > { %1186 = vmatprep.subr.msk.bf16.mxu1 %vm409_vm0, %v596_v56 }
  0xb9   : > { %607 = vmatpush1.bf16.msra.mxu1 %v601_v54  ;;  %v908_v57 = vpop.permute.xlu1 %907 }
  0xba   : > { %v906_v60 = vpop.permute.xlu0 %905 }
  0xbb   : > { %v910_v61 = vsel %vm909_vm9, %v904_v53, %v906_v60  ;;  %v911_v62 = vsel %vm909_vm9, %v906_v60, %v908_v57 }
  0xbc   : > { %v916_v63 = vsel %vm409_vm0, %v910_v61, 0  ;;  %1187 = vmatmul.mubr.msk.bf16.vlgmr.msra.gmra.mrb[0].mxu1 %vm405_vm1, %v1185_v58  ;;  %1199 = vmatmul.mubr.msk.bf16.vlgmr.msra.gmra.mrb[0].mxu0 %vm405_vm1, %v1197_v59 }
  0xbd   : > { %1201 = vmatprep.subr.msk.bf16.mxu0 %vm409_vm0, %v911_v62  ;;  %953 = vmatprep.mubr.bf16.mxu0 %v1395_v0 }
  0xbe   : > { %922 = vmatpush1.bf16.msra.mxu0 %v916_v63 }
  0xc8   : > { %1202 = vmatmul.mubr.msk.bf16.vlgmr.msra.gmra.mrb[0].mxu0 %vm405_vm1, %v1200_v1 }
  0xca   : > { %v983_v11 = vpop.permute.xlu1 %982 }
  0xcb   : > { %v975_v7 = vpop.permute.xlu0 %974 }
 0x18f   : > { %v640_v2 = vpop.f32.mrb[0].mxu1 }
 0x190   : > { %v642_v3 = vpop.f32.mrb[1].mxu1 }
 0x191   : > { %v644_v4 = vpop.f32.mrb[2].mxu1 }
 0x192   : > { %v645_v5 = vpop.f32.mrb[3].mxu1 }
 0x19b   : > { %v955_v6 = vpop.f32.mrb[0].mxu0 }
 0x19c   : > { %v1217_v8 = vadd.f32 %v955_v6, %v640_v2  ;;  %v957_v9 = vpop.f32.mrb[1].mxu0 }
 0x19d   : > { %v1218_v10 = vadd.f32 %v957_v9, %v642_v3  ;;  %v959_v0 = vpop.f32.mrb[2].mxu0 }
 0x19e   : > { %v977_v12 = vmul.f32 %v1217_v8, %v975_v7  ;;  %v960_v13 = vpop.f32.mrb[3].mxu0 }
 0x19f   : > { %v978_v14 = vmul.f32 %v1218_v10, %v975_v7 }
 0x1a0   : > { %v985_v15 = vadd.f32 %v983_v11, %v977_v12 }
 0x1a1   : > { %v986_v16 = vadd.f32 %v983_v11, %v978_v14 }
 0x1a2   : > { %v987_v17 = vmax.f32 %v985_v15, 0.0 }
 0x1a3   : > { %v988_v18 = vmax.f32 %v986_v16, 0.0 }
 0x1a5   : > { %v1215_v19 = vpack.c.bf16 %v988_v18, %v987_v17 }
 0x1a7   : > { %997 = vst [vmem:[%s341_s27] sm:$0xff] %v1215_v19 }
 0x1a8   : > { %1328 = shalt.err (!%p1325_p6)
}
 0x1a9   : > { %s1329_s14 = scalar_lea.hbm %s1573_s9, 128  ;;  %s1333_s17 = scalar_lea.hbm %s1625_s5, 384 }
 0x1aa   : > { %p1330_p7 = scmp.ne.s32.totalorder %s1573_s9, %s1329_s14  ;;  %p1334_p11 = scmp.lt.u32.totalorder %s1573_s9, %s1625_s5 }
 0x1ab   : > { %p1335_p12 = scmp.lt.u32.totalorder %s1333_s17, %s1329_s14  ;;  %p1337_p0 = scmp.lt.u32.totalorder %s1329_s14, %s1573_s9 }
 0x1ac   : > { %p1331_p9 = pnand %p1330_p7, %p1475_p4 }
 0x1ad   : > { %p1336_p13 = por %p1335_p12, %p1334_p11 }
 0x1ae   : > { %p1332_p10 = pneg %p1331_p9 }
 0x1af   : > { %p1338_p1 = por %p1337_p0, %p1336_p13 }
 0x1b1   : > { %p1339_p2 = pnand %p1338_p1, %p1332_p10 }
 0x1b3   : > { %1342 = shalt.err (!%p1339_p2)
}
 0x1b4   : > { %1247 = dma.vmem_to_hbm [thread:$0]  (%p1475_p4), %s1575_s29, 128, %s1573_s9, %s999_s10  }
 0x1b5 PF: > { %p1253_p3 = scmp.ge.s32.totalorder %s1393_s23, 2  ;;  %s1027_s27 = sand.u32 1, %s1373_s18  }
 0x1b6   : > { %s1028_s7 = scalar_lea.sflag [#allocation4], %s1027_s27 }
 0x1b7   : > { %p1250_p5 = pnand %p1253_p3, %p1482_p8 }
 0x1b9   : > { %1368 = dma.done.wait (!%p1250_p5), %s1028_s7, 128  }
 0x1ba   : > { %1370 = vsyncadd (!%p1250_p5), %s1028_s7, 4294967168  ;;  %s18_s23 = sadd.s32 1, %s1393_s23   ;;  %s1628_s18 = smov %s1377_s19 }
 0x1bb   : > { %p15_p6 = scmp.ge.s32.totalorder %s18_s23, 5   ;;  %s1629_s19 = smov %s1381_s20 }
 0x1bc   : > { %s1630_s20 = smov %s1488_s6  ;;  %s1631_s21 = smov %s1389_s22 }
 0x1bd   : > { %s1632_s22 = smov %s1634_s26  ;;  %17 = sbr.rel (!%p15_p6) target bundleno = 4 (0x4), region = 103 }
 0x1c4   :  { %1033 = vsyncpa [#allocation4], 1 }
 0x1c5   :  { %1035 = vsyncpa [#allocation4 + $0x1], 1 }

</bundles_post_ra>
